<compile_context>
chip_gen: v7x
topology: tpu7x:2x2x1
jax: 0.10.0
libtpu: 0.0.40
codegen_flags: <defaults>
</compile_context>

<pallas_src>
import jax
import jax.numpy as jnp
from jax.experimental import pallas as pl
from jax.experimental.pallas import tpu as pltpu


def _round_up(x, m):
    return (x + m - 1) // m * m


def _make_kernel(kk, Wph, TP, OFFW, inv_count, eps, co_tile):
    """Fused conv (sum of shifted matmuls) + InstanceNorm + LeakyReLU body."""

    def kernel(mask_ref, x_ref, w_ref, o_ref, sum_ref, ssq_ref):
        # mask_ref: (1, TP) f32            x_ref: (1, C', L_in) bf16 (resident per n)
        # w_ref:    (kk*kk, co_tile, C')   o_ref: (1, co_tile, P_pad) f32 (resident per (n,co))
        # sum_ref / ssq_ref: (co_tile, 1) f32 running stats
        p = pl.program_id(2)
        n_p = pl.num_programs(2)

        @pl.when(p == 0)
        def _():
            sum_ref[...] = jnp.zeros_like(sum_ref)
            ssq_ref[...] = jnp.zeros_like(ssq_ref)

        # One lane-aligned dynamic window of the resident input covers every
        # shifted view this tile needs; the kk*kk shifts are static slices.
        col0 = pl.multiple_of(p * TP, TP)
        win = x_ref[0, :, pl.ds(col0, TP + OFFW)]            # (C', TP+OFFW) bf16

        acc = jnp.zeros((co_tile, TP), jnp.float32)
        for a in range(kk):
            for b in range(kk):
                off = a * Wph + b                            # static shift
                acc = acc + jnp.dot(w_ref[a * kk + b], win[:, off:off + TP],
                                    preferred_element_type=jnp.float32)

        # Streaming per-channel stats over VALID output columns only.
        ym = acc * mask_ref[...]                             # (co,TP) * (1,TP)
        sum_ref[...] += jnp.sum(ym, axis=1, keepdims=True)
        ssq_ref[...] += jnp.sum(ym * ym, axis=1, keepdims=True)

        # Stage the un-normalized conv output in the resident output block
        # (lane-aligned store: col0 and TP are multiples of 128).
        o_ref[0, :, pl.ds(col0, TP)] = acc

        # Finalize on the last P tile: InstanceNorm (biased var, eps) + LeakyReLU.
        @pl.when(p == n_p - 1)
        def _():
            mean = sum_ref[...] * inv_count                  # (co, 1)
            var = jnp.maximum(ssq_ref[...] * inv_count - mean * mean, 0.0)
            inv_std = jax.lax.rsqrt(var + eps)
            scale = inv_std
            shift = -mean * inv_std
            y = o_ref[0] * scale + shift                     # one FMA / element
            o_ref[0] = jnp.maximum(y, 0.2 * y)               # LeakyReLU(0.2)

    return kernel


def block_forward(x_nchw, weight, bias, stride):
    """Conv2d(k=4, stride, pad=1 reflect, bias) -> InstanceNorm2d -> LeakyReLU(0.2).

    x_nchw: (N, Cin, H, W) f32; weight: (Cout, Cin, 4, 4); bias: (Cout,).
    Returns (N, Cout, Ho, Wo) f32.
    """
    del bias  # exactly cancelled by InstanceNorm2d(affine=False) mean subtraction
    N, Cin, H, W = x_nchw.shape
    Cout, _, kh, kw = weight.shape
    assert kh == 4 and kw == 4
    s = int(stride)
    if kh % s != 0:
        # TODO(synk): general strides need an in-kernel strided patch gather.
        raise NotImplementedError("stride must divide the kernel size (1, 2 or 4)")
    kk = kh // s                       # per-phase (stride-1) kernel size
    Cp = s * s * Cin                   # phase-expanded channel count

    Hp, Wp = H + 2, W + 2              # reflect-padded extent (pad=1)
    Ho = (Hp - kh) // s + 1
    Wo = (Wp - kw) // s + 1
    Hph, Wph = Ho + kk - 1, Wo + kk - 1  # phase-plane extent actually used

    # ----- wrapper: layout only (reflect pad + space-to-depth), NO im2col -----
    xp = jnp.pad(x_nchw, ((0, 0), (0, 0), (1, 1), (1, 1)), mode="reflect")
    if s == 1:
        xph = xp[:, :, :Hph, :Wph]
    else:
        phases = [xp[:, :, r:r + s * Hph:s, c:c + s * Wph:s]
                  for r in range(s) for c in range(s)]
        xph = jnp.concatenate(phases, axis=1)             # (N, Cp, Hph, Wph)

    # Flattened output column space: m = h*Wph + w  (w >= Wo / h >= Ho = padding)
    P_valid = Ho * Wph
    P_true = Ho * Wo
    P128 = _round_up(P_valid, 128)
    TP = 128
    for cand in (256, 512, 1024, 2048):                   # bigger tiles when P is big
        if P128 % cand == 0 or P128 >= 8 * cand:
            TP = cand
    P_pad = _round_up(P_valid, TP)
    n_p = P_pad // TP

    max_off = (kk - 1) * (Wph + 1)                        # largest static in-kernel shift
    OFFW = _round_up(max(max_off, 1), 128)
    L_in = P_pad + OFFW

    xflat = xph.reshape(N, Cp, Hph * Wph).astype(jnp.bfloat16)
    xflat = jnp.pad(xflat, ((0, 0), (0, 0), (0, L_in - Hph * Wph)))

    # weight (Cout, Cin, 4, 4) -> (kk*kk, Cout, Cp) matching the phase order
    w6 = weight.reshape(Cout, Cin, kk, s, kk, s)          # i = a*s + r, j = b*s + c
    w_ph = w6.transpose(0, 3, 5, 1, 2, 4).reshape(Cout, Cp, kk, kk)
    w_k = w_ph.transpose(2, 3, 0, 1).reshape(kk * kk, Cout, Cp).astype(jnp.bfloat16)

    # Validity mask over flat output columns (1 = real pixel, 0 = layout padding).
    m = jnp.arange(P_pad, dtype=jnp.int32)
    mask = (((m % Wph) < Wo) & (m < P_valid)).astype(jnp.float32).reshape(1, P_pad)

    # Cout split: second source of core parallelism (v7x 2 TCs) when N == 1.
    co_tile = Cout // 2 if (N < 2 and Cout % 16 == 0) else Cout
    n_co = Cout // co_tile

    # VMEM budget (double-buffered blocks) and explicit scoped limit.
    est = (2 * Cp * L_in * 2                 # resident phase image, bf16
           + 2 * co_tile * P_pad * 4         # resident un-normalized output, f32
           + 2 * kk * kk * co_tile * Cp * 2  # weights, bf16
           + 2 * TP * 4                      # mask tile
           + 2 * _round_up(co_tile, 8) * 128 * 4)  # stats scratch (tile-padded)
    assert est < (56 << 20), (
        f"VMEM estimate {est >> 20} MiB exceeds the v7x budget; add Cout/K tiling")
    vmem_limit = int(min(max(est + (8 << 20), 16 << 20), 64 << 20))

    kernel = _make_kernel(kk, Wph, TP, OFFW, 1.0 / float(P_true), 1e-5, co_tile)

    out = pl.pallas_call(
        kernel,
        out_shape=jax.ShapeDtypeStruct((N, Cout, P_pad), jnp.float32),
        grid_spec=pltpu.PrefetchScalarGridSpec(
            num_scalar_prefetch=0,
            grid=(N, n_co, n_p),
            in_specs=[
                pl.BlockSpec((1, TP), lambda n, co, p: (0, p)),            # mask
                pl.BlockSpec((1, Cp, L_in), lambda n, co, p: (n, 0, 0)),   # phase image
                pl.BlockSpec((kk * kk, co_tile, Cp), lambda n, co, p: (0, co, 0)),
            ],
            out_specs=pl.BlockSpec((1, co_tile, P_pad), lambda n, co, p: (n, co, 0)),
            scratch_shapes=[
                pltpu.VMEM((co_tile, 1), jnp.float32),   # running sum
                pltpu.VMEM((co_tile, 1), jnp.float32),   # running sum of squares
            ],
        ),
        compiler_params=pltpu.CompilerParams(
            dimension_semantics=("parallel", "parallel", "arbitrary"),
            vmem_limit_bytes=vmem_limit,
        ),
    )(mask, xflat, w_k)

    # Crop the lane padding: flat columns (row stride Wph) -> (Ho, Wo).
    out = out[:, :, :Ho * Wph].reshape(N, Cout, Ho, Wph)[:, :, :, :Wo]
    return out


def _reference(x, weight, bias, stride):
    """Pure-JAX f32 reference of the PyTorch Block forward."""
    s = int(stride)
    xp = jnp.pad(x, ((0, 0), (0, 0), (1, 1), (1, 1)), mode="reflect")
    y = jax.lax.conv_general_dilated(
        xp, weight, window_strides=(s, s), padding="VALID",
        dimension_numbers=("NCHW", "OIHW", "NCHW"))
    y = y + bias[None, :, None, None]
    mu = jnp.mean(y, axis=(2, 3), keepdims=True)
    var = jnp.var(y, axis=(2, 3), keepdims=True)
    y = (y - mu) * jax.lax.rsqrt(var + 1e-5)
    return jnp.where(y >= 0, y, 0.2 * y)


if __name__ == "__main__":
    # Small shapes consistent with the module: Block(in_channels=4, out_channels=8, stride=2)
    N, Cin, H, W = 2, 4, 16, 16
    Cout, stride = 8, 2

    key = jax.random.PRNGKey(0)
    kx, kw_, kb = jax.random.split(key, 3)

    x = jax.random.normal(kx, (N, Cin, H, W), dtype=jnp.float32)
    fan_in = Cin * 4 * 4
    bound = 1.0 / (fan_in ** 0.5)
    weight = jax.random.uniform(kw_, (Cout, Cin, 4, 4), jnp.float32, -bound, bound)
    bias = jax.random.uniform(kb, (Cout,), jnp.float32, -bound, bound)

    y = block_forward(x, weight, bias, stride)
    jax.block_until_ready(y)

    # Expected output spatial size: ((H+2) - 4)//stride + 1 = 8
    assert y.shape == (N, Cout, 8, 8), y.shape
    assert bool(jnp.all(jnp.isfinite(y)))

    # Loose tolerance: the kernel uses bf16 conv operands with f32 accumulation.
    y_ref = _reference(x, weight, bias, stride)
    err = float(jnp.max(jnp.abs(y - y_ref)))
    assert err < 5e-2, f"max abs err vs reference: {err}"

    print("KERNEL_OK")
</pallas_src>

<mosaic_0001>
module attributes {stable_mosaic.version = 11 : i64} {
  func.func @kernel(%arg0: i32, %arg1: i32, %arg2: i32, %arg3: memref<1x128xf32, #tpu.memory_space<vmem>>, %arg4: memref<1x16x256xbf16, #tpu.memory_space<vmem>>, %arg5: memref<4x8x16xbf16, #tpu.memory_space<vmem>>, %arg6: memref<1x8x128xf32, #tpu.memory_space<vmem>>, %arg7: memref<8x1xf32, #tpu.memory_space<vmem>>, %arg8: memref<8x1xf32, #tpu.memory_space<vmem>>) attributes {dimension_semantics = [#tpu.dimension_semantics<parallel>, #tpu.dimension_semantics<parallel>, #tpu.dimension_semantics<arbitrary>], iteration_bounds = array<i64: 2, 1, 1>, scalar_prefetch = 0 : i64, scratch_operands = 2 : i64, tpu.core_type = #tpu.core_type<tc>, window_params = [{transform_indices = @transform_0, window_bounds = array<i64: 1, 128>}, {transform_indices = @transform_1, window_bounds = array<i64: 1, 16, 256>}, {transform_indices = @transform_2, window_bounds = array<i64: 4, 8, 16>}, {transform_indices = @transform_3, window_bounds = array<i64: 1, 8, 128>}]} {
    %c0_i32 = arith.constant 0 : i32
    %0 = arith.cmpi eq, %arg2, %c0_i32 : i32
    %1 = arith.extui %0 : i1 to i32
    %c0_i32_0 = arith.constant 0 : i32
    %2 = arith.cmpi ne, %1, %c0_i32_0 : i32
    scf.if %2 {
      %cst_31 = arith.constant 0.000000e+00 : f32
      %50 = vector.broadcast %cst_31 : f32 to vector<8x1xf32>
      %c0_32 = arith.constant 0 : index
      %c0_33 = arith.constant 0 : index
      %51 = vector.load %arg7[%c0_32, %c0_33] : memref<8x1xf32, #tpu.memory_space<vmem>>, vector<8x1xf32>
      tpu.vector_store %arg7[%c0_32, %c0_33], %50 {strides = array<i32>} : memref<8x1xf32, #tpu.memory_space<vmem>>, vector<8x1xf32>,
      %cst_34 = arith.constant 0.000000e+00 : f32
      %52 = vector.broadcast %cst_34 : f32 to vector<8x1xf32>
      %c0_35 = arith.constant 0 : index
      %c0_36 = arith.constant 0 : index
      %53 = vector.load %arg8[%c0_35, %c0_36] : memref<8x1xf32, #tpu.memory_space<vmem>>, vector<8x1xf32>
      tpu.vector_store %arg8[%c0_35, %c0_36], %52 {strides = array<i32>} : memref<8x1xf32, #tpu.memory_space<vmem>>, vector<8x1xf32>,
    } else {
    }
    %c128_i32 = arith.constant 128 : i32
    %3 = arith.muli %arg2, %c128_i32 : i32
    %4 = tpu.assume_multiple %3, 128 : i32
    %c0 = arith.constant 0 : index
    %c0_1 = arith.constant 0 : index
    %5 = arith.index_cast %4 : i32 to index
    %6 = vector.load %arg4[%c0, %c0_1, %5] : memref<1x16x256xbf16, #tpu.memory_space<vmem>>, vector<1x16x256xbf16>
    %7 = vector.shape_cast %6 : vector<1x16x256xbf16> to vector<16x256xbf16>
    %cst = arith.constant 0.000000e+00 : f32
    %8 = vector.broadcast %cst : f32 to vector<8x128xf32>
    %c0_2 = arith.constant 0 : index
    %c0_3 = arith.constant 0 : index
    %c0_4 = arith.constant 0 : index
    %9 = vector.load %arg5[%c0_2, %c0_3, %c0_4] : memref<4x8x16xbf16, #tpu.memory_space<vmem>>, vector<1x8x16xbf16>
    %10 = vector.shape_cast %9 : vector<1x8x16xbf16> to vector<8x16xbf16>
    %11 = vector.extract_strided_slice %7 {offsets = [0, 0], sizes = [16, 128], strides = [1, 1]} : vector<16x256xbf16> to vector<16x128xbf16>
    %cst_5 = arith.constant dense<0.000000e+00> : vector<8x128xf32>
    %12 = tpu.matmul %10, %11, %cst_5 {dimension_numbers = #tpu.dot_dimension_numbers<[1], [0], [0], [1], [0, 0, 1, 1], [], []>} : vector<8x16xbf16>, vector<16x128xbf16>, vector<8x128xf32> -> vector<8x128xf32>
    %13 = arith.addf %8, %12 : vector<8x128xf32>
    %c1 = arith.constant 1 : index
    %c0_6 = arith.constant 0 : index
    %c0_7 = arith.constant 0 : index
    %14 = vector.load %arg5[%c1, %c0_6, %c0_7] : memref<4x8x16xbf16, #tpu.memory_space<vmem>>, vector<1x8x16xbf16>
    %15 = vector.shape_cast %14 : vector<1x8x16xbf16> to vector<8x16xbf16>
    %16 = vector.extract_strided_slice %7 {offsets = [0, 1], sizes = [16, 128], strides = [1, 1]} : vector<16x256xbf16> to vector<16x128xbf16>
    %cst_8 = arith.constant dense<0.000000e+00> : vector<8x128xf32>
    %17 = tpu.matmul %15, %16, %cst_8 {dimension_numbers = #tpu.dot_dimension_numbers<[1], [0], [0], [1], [0, 0, 1, 1], [], []>} : vector<8x16xbf16>, vector<16x128xbf16>, vector<8x128xf32> -> vector<8x128xf32>
    %18 = arith.addf %13, %17 : vector<8x128xf32>
    %c2 = arith.constant 2 : index
    %c0_9 = arith.constant 0 : index
    %c0_10 = arith.constant 0 : index
    %19 = vector.load %arg5[%c2, %c0_9, %c0_10] : memref<4x8x16xbf16, #tpu.memory_space<vmem>>, vector<1x8x16xbf16>
    %20 = vector.shape_cast %19 : vector<1x8x16xbf16> to vector<8x16xbf16>
    %21 = vector.extract_strided_slice %7 {offsets = [0, 9], sizes = [16, 128], strides = [1, 1]} : vector<16x256xbf16> to vector<16x128xbf16>
    %cst_11 = arith.constant dense<0.000000e+00> : vector<8x128xf32>
    %22 = tpu.matmul %20, %21, %cst_11 {dimension_numbers = #tpu.dot_dimension_numbers<[1], [0], [0], [1], [0, 0, 1, 1], [], []>} : vector<8x16xbf16>, vector<16x128xbf16>, vector<8x128xf32> -> vector<8x128xf32>
    %23 = arith.addf %18, %22 : vector<8x128xf32>
    %c3 = arith.constant 3 : index
    %c0_12 = arith.constant 0 : index
    %c0_13 = arith.constant 0 : index
    %24 = vector.load %arg5[%c3, %c0_12, %c0_13] : memref<4x8x16xbf16, #tpu.memory_space<vmem>>, vector<1x8x16xbf16>
    %25 = vector.shape_cast %24 : vector<1x8x16xbf16> to vector<8x16xbf16>
    %26 = vector.extract_strided_slice %7 {offsets = [0, 10], sizes = [16, 128], strides = [1, 1]} : vector<16x256xbf16> to vector<16x128xbf16>
    %cst_14 = arith.constant dense<0.000000e+00> : vector<8x128xf32>
    %27 = tpu.matmul %25, %26, %cst_14 {dimension_numbers = #tpu.dot_dimension_numbers<[1], [0], [0], [1], [0, 0, 1, 1], [], []>} : vector<8x16xbf16>, vector<16x128xbf16>, vector<8x128xf32> -> vector<8x128xf32>
    %28 = arith.addf %23, %27 : vector<8x128xf32>
    %c0_15 = arith.constant 0 : index
    %c0_16 = arith.constant 0 : index
    %29 = vector.load %arg3[%c0_15, %c0_16] : memref<1x128xf32, #tpu.memory_space<vmem>>, vector<1x128xf32>
    %30 = vector.broadcast %29 : vector<1x128xf32> to vector<8x128xf32>
    %31 = arith.mulf %28, %30 : vector<8x128xf32>
    %c0_17 = arith.constant 0 : index
    %c0_18 = arith.constant 0 : index
    %32 = vector.load %arg7[%c0_17, %c0_18] : memref<8x1xf32, #tpu.memory_space<vmem>>, vector<8x1xf32>
    %cst_19 = arith.constant dense<0.000000e+00> : vector<8xf32>
    %33 = vector.multi_reduction <add>, %31, %cst_19 [1] : vector<8x128xf32> to vector<8xf32>
    %34 = vector.shape_cast %33 : vector<8xf32> to vector<8x1xf32>
    %35 = arith.addf %32, %34 : vector<8x1xf32>
    %c0_20 = arith.constant 0 : index
    %c0_21 = arith.constant 0 : index
    %36 = vector.load %arg7[%c0_20, %c0_21] : memref<8x1xf32, #tpu.memory_space<vmem>>, vector<8x1xf32>
    tpu.vector_store %arg7[%c0_20, %c0_21], %35 {strides = array<i32>} : memref<8x1xf32, #tpu.memory_space<vmem>>, vector<8x1xf32>,
    %c0_22 = arith.constant 0 : index
    %c0_23 = arith.constant 0 : index
    %37 = vector.load %arg8[%c0_22, %c0_23] : memref<8x1xf32, #tpu.memory_space<vmem>>, vector<8x1xf32>
    %38 = arith.mulf %31, %31 : vector<8x128xf32>
    %cst_24 = arith.constant dense<0.000000e+00> : vector<8xf32>
    %39 = vector.multi_reduction <add>, %38, %cst_24 [1] : vector<8x128xf32> to vector<8xf32>
    %40 = vector.shape_cast %39 : vector<8xf32> to vector<8x1xf32>
    %41 = arith.addf %37, %40 : vector<8x1xf32>
    %c0_25 = arith.constant 0 : index
    %c0_26 = arith.constant 0 : index
    %42 = vector.load %arg8[%c0_25, %c0_26] : memref<8x1xf32, #tpu.memory_space<vmem>>, vector<8x1xf32>
    tpu.vector_store %arg8[%c0_25, %c0_26], %41 {strides = array<i32>} : memref<8x1xf32, #tpu.memory_space<vmem>>, vector<8x1xf32>,
    %c0_27 = arith.constant 0 : index
    %c0_28 = arith.constant 0 : index
    %43 = arith.index_cast %4 : i32 to index
    %44 = vector.load %arg6[%c0_27, %c0_28, %43] : memref<1x8x128xf32, #tpu.memory_space<vmem>>, vector<1x8x128xf32>
    %45 = vector.shape_cast %44 : vector<1x8x128xf32> to vector<8x128xf32>
    %46 = vector.shape_cast %28 : vector<8x128xf32> to vector<1x8x128xf32>
    tpu.vector_store %arg6[%c0_27, %c0_28, %43], %46 {strides = array<i32>} : memref<1x8x128xf32, #tpu.memory_space<vmem>>, vector<1x8x128xf32>,
    %c0_i32_29 = arith.constant 0 : i32
    %47 = arith.cmpi eq, %arg2, %c0_i32_29 : i32
    %48 = arith.extui %47 : i1 to i32
    %c0_i32_30 = arith.constant 0 : i32
    %49 = arith.cmpi ne, %48, %c0_i32_30 : i32
    scf.if %49 {
      %c0_31 = arith.constant 0 : index
      %c0_32 = arith.constant 0 : index
      %50 = vector.load %arg7[%c0_31, %c0_32] : memref<8x1xf32, #tpu.memory_space<vmem>>, vector<8x1xf32>
      %cst_33 = arith.constant 1.562500e-02 : f32
      %51 = vector.broadcast %cst_33 : f32 to vector<8x1xf32>
      %52 = arith.mulf %50, %51 : vector<8x1xf32>
      %c0_34 = arith.constant 0 : index
      %c0_35 = arith.constant 0 : index
      %53 = vector.load %arg8[%c0_34, %c0_35] : memref<8x1xf32, #tpu.memory_space<vmem>>, vector<8x1xf32>
      %cst_36 = arith.constant 1.562500e-02 : f32
      %54 = vector.broadcast %cst_36 : f32 to vector<8x1xf32>
      %55 = arith.mulf %53, %54 : vector<8x1xf32>
      %56 = arith.mulf %52, %52 : vector<8x1xf32>
      %57 = arith.subf %55, %56 : vector<8x1xf32>
      %cst_37 = arith.constant 0.000000e+00 : f32
      %58 = vector.broadcast %cst_37 : f32 to vector<8x1xf32>
      %59 = arith.maximumf %57, %58 : vector<8x1xf32>
      %cst_38 = arith.constant 9.99999974E-6 : f32
      %60 = vector.broadcast %cst_38 : f32 to vector<8x1xf32>
      %61 = arith.addf %59, %60 : vector<8x1xf32>
      %62 = math.rsqrt %61 : vector<8x1xf32>
      %cst_39 = arith.constant 0.000000e+00 : f32
      %63 = vector.broadcast %cst_39 : f32 to vector<8x1xf32>
      %64 = arith.subf %63, %52 : vector<8x1xf32>
      %65 = arith.mulf %64, %62 : vector<8x1xf32>
      %c0_40 = arith.constant 0 : index
      %c0_41 = arith.constant 0 : index
      %c0_42 = arith.constant 0 : index
      %66 = vector.load %arg6[%c0_40, %c0_41, %c0_42] : memref<1x8x128xf32, #tpu.memory_space<vmem>>, vector<1x8x128xf32>
      %67 = vector.shape_cast %66 : vector<1x8x128xf32> to vector<8x128xf32>
      %68 = vector.broadcast %62 : vector<8x1xf32> to vector<8x128xf32>
      %69 = arith.mulf %67, %68 : vector<8x128xf32>
      %70 = vector.broadcast %65 : vector<8x1xf32> to vector<8x128xf32>
      %71 = arith.addf %69, %70 : vector<8x128xf32>
      %cst_43 = arith.constant 2.000000e-01 : f32
      %72 = vector.broadcast %cst_43 : f32 to vector<8x128xf32>
      %73 = arith.mulf %72, %71 : vector<8x128xf32>
      %74 = arith.maximumf %71, %73 : vector<8x128xf32>
      %c0_44 = arith.constant 0 : index
      %c0_45 = arith.constant 0 : index
      %c0_46 = arith.constant 0 : index
      %75 = vector.load %arg6[%c0_44, %c0_45, %c0_46] : memref<1x8x128xf32, #tpu.memory_space<vmem>>, vector<1x8x128xf32>
      %76 = vector.shape_cast %75 : vector<1x8x128xf32> to vector<8x128xf32>
      %77 = vector.shape_cast %74 : vector<8x128xf32> to vector<1x8x128xf32>
      tpu.vector_store %arg6[%c0_44, %c0_45, %c0_46], %77 {strides = array<i32>} : memref<1x8x128xf32, #tpu.memory_space<vmem>>, vector<1x8x128xf32>,
    } else {
    }
    return
  }
  func.func @transform_0(%arg0: i32, %arg1: i32, %arg2: i32) -> (i32, i32) {
    %c0_i32 = arith.constant 0 : i32
    %c0_i32_0 = arith.constant 0 : i32
    return %c0_i32, %arg2 : i32, i32
  }
  func.func @transform_1(%arg0: i32, %arg1: i32, %arg2: i32) -> (i32, i32, i32) {
    %c0_i32 = arith.constant 0 : i32
    %c0_i32_0 = arith.constant 0 : i32
    %c0_i32_1 = arith.constant 0 : i32
    return %arg0, %c0_i32, %c0_i32_0 : i32, i32, i32
  }
  func.func @transform_2(%arg0: i32, %arg1: i32, %arg2: i32) -> (i32, i32, i32) {
    %c0_i32 = arith.constant 0 : i32
    %c0_i32_0 = arith.constant 0 : i32
    %c0_i32_1 = arith.constant 0 : i32
    return %c0_i32, %arg1, %c0_i32_0 : i32, i32, i32
  }
  func.func @transform_3(%arg0: i32, %arg1: i32, %arg2: i32) -> (i32, i32, i32) {
    %c0_i32 = arith.constant 0 : i32
    %c0_i32_0 = arith.constant 0 : i32
    return %arg0, %arg1, %c0_i32 : i32, i32, i32
  }
}

</mosaic_0001>

<bundles_post_ra>
// kernel: tpu_custom_call.1
= control target key start
LH: loop header
LB: loop body
LE: loop exit
PB: predicated region body
PF: predicated region fallthrough
CT: control target
= control target key end

     0   :  { %8 = vsyncpa [#allocation5], 0  ;;  %s1289_s0 = inlined_call_operand.hbm [shape: f32[1,128], index: 0, kind: input, shape index: {}]   ;;  %s1290_s1 = inlined_call_operand.hbm [shape: bf16[2,16,256], index: 1, kind: input, shape index: {}]   ;;  %s1291_s2 = inlined_call_operand.hbm [shape: bf16[4,8,16], index: 2, kind: input, shape index: {}]   ;;  %s1292_s3 = inlined_call_operand.hbm [shape: f32[2,8,128], index: 3, kind: output, shape index: {}]  }
   0x1   :  { %9 = vsyncpa [#allocation8], 0 }
   0x2   :  { %11 = vsyncpa [#allocation8 + $0x1], 0 }
   0x3   :  { %12 = vsyncpa [#allocation6], 0 }
   0x4   :  { %14 = vsyncpa [#allocation6 + $0x1], 0  ;;  %s1034_s12 = smov 0   ;;  %s1036_s13 = smov 0  }
   0x5   :  { %s1038_s14 = smov 0   ;;  %s1040_s15 = smov 0  }
   0x6   :  { %s1042_s16 = smov 0   ;;  %s1044_s17 = smov 0  }
   0x7 LB: > { %s1065_s18 = sadd.s32 4294967295, %s998_s17   ;;  %s656_s19 = sadd.s32 4294967294, %s998_s17   ;;  %s998_s17 = sphi %s1044_s17, %s20_s17   ;;  %s994_s16 = sphi %s1042_s16, %s1319_s16   ;;  %s990_s15 = sphi %s1040_s15, %s1318_s15   ;;  %s986_s14 = sphi %s1038_s14, %s1317_s14   ;;  %s982_s13 = sphi %s1036_s13, %s1316_s13   ;;  %s978_s12 = sphi %s1034_s12, %s1315_s12  }
   0x8   : > { %p79_p0 = scmp.ne.s32.totalorder %s986_s14, %s982_s13  ;;  %p80_p1 = scmp.eq.s32.totalorder %s998_s17, 0 }
   0x9   : > { %p85_p2 = scmp.ne.s32.totalorder %s982_s13, %s978_s12  ;;  %p1293_p3 = scmp.eq.s32.totalorder %s1065_s18, 0 }
   0xa   : > { %p1074_p4 = por %p80_p1, %p79_p0  ;;  %p137_p5 = scmp.eq.s32.totalorder %s1065_s18, 1 }
   0xb   : > { %p1081_p6 = por %p1293_p3, %p85_p2  ;;  %p143_p7 = scmp.eq.s32.totalorder %s656_s19, 1 }
   0xc   : > { %p1085_p8 = por %p137_p5, %p79_p0  ;;  %p657_p9 = scmp.ge.s32.totalorder %s998_s17, 1 }
   0xd   : > { %s1299_s21 = scalar_select %p1081_p6, 1, 0 }
   0xe   : > { %s1300_s22 = scalar_select %p1085_p8, 1, 0 }
   0xf   : > { %p1090_p10 = por %p143_p7, %p85_p2  ;;  %p150_p11 = scmp.lt.s32.totalorder %s998_s17, 3 }
  0x10   : > { %s1000_s25 = smov [#allocation9]   ;;  %p751_p1 = scmp.lt.s32.totalorder %s998_s17, 2 }
  0x11   : > { %s1301_s23 = scalar_select %p1090_p10, 1, 0 }
  0x12   : > { %p1095_p12 = pnand %p657_p9, %p150_p11  ;;  %s177_s26 = sshll.u32 %s1000_s25, 4  ;;  %s178_s26 = int_to_ptr.vmem [resolvable:$true] %s177_s26 }
  0x13   : > { %p1111_p2 = pnand %p751_p1, %p1074_p4  ;;  %s822_s4 = scalar_lea.hbm %s1291_s2, 256 }
  0x14   : > { %s1302_s24 = scalar_select %p1095_p12, 1, 0 }
  0x15   : > { %p734_p13 = pneg %p1095_p12  ;;  %p823_p7 = scmp.ne.s32.totalorder %s1291_s2, %s822_s4 }
  0x16   : > { %s1304_s28 = scalar_select %p1111_p2, 1, 0 }
  0x17   : > { %p1105_p5 = pnand %p734_p13, %p1293_p3  ;;  %p829_p4 = scmp.lt.u32.totalorder %s822_s4, %s1291_s2 }
  0x19   : > { %p824_p9 = pneg %p1105_p5 }
  0x1b   : > { %p825_p11 = pnand %p824_p9, %p823_p7 }
  0x1d   : > { %p826_p13 = pneg %p825_p11 }
  0x1f   : > { %p831_p1 = pnand %p829_p4, %p826_p13 }
  0x21   : > { %834 = shalt.err (!%p831_p1)
}
  0x22   : > { %s835_s9 = scalar_lea.vmem %s178_s26, 256  ;;  %p843_p8 = scmp.lt.s32.totalorder %s178_s26, %s178_s26 }
  0x23   : > { %p836_p0 = scmp.ne.s32.totalorder %s178_s26, %s835_s9  ;;  %p844_p6 = scmp.lt.s32.totalorder %s835_s9, %s835_s9 }
  0x25   : > { %p838_p3 = pnand %p836_p0, %p824_p9  ;;  %p845_p12 = por %p844_p6, %p843_p8 }
  0x27   : > { %p839_p10 = pneg %p838_p3 }
  0x29   : > { %p846_p2 = pnand %p845_p12, %p839_p10 }
  0x2b   : > { %849 = shalt.err (!%p846_p2)
}
  0x2c   : > { %s1001_s10 = smov 64   ;;  %s1002_s11 = smov 4  }
  0x2d   : > { %740 = dma.hbm_to_vmem [thread:$0]  (!%p1105_p5), %s1291_s2, 256, %s178_s26, [#allocation8], %s1001_s10, %s1001_s10, %s1002_s11  }
  0x2e   : > { %s1003_s25 = smov [#allocation4]   ;;  %s850_s5 = scalar_lea.hbm %s1289_s0, 16 }
  0x2f   : > { %s165_s29 = sshll.u32 %s1003_s25, 4  ;;  %p851_p3 = scmp.ne.s32.totalorder %s1289_s0, %s850_s5  ;;  %s166_s29 = int_to_ptr.vmem [resolvable:$true] %s165_s29 }
  0x30   : > { %p857_p10 = scmp.lt.u32.totalorder %s850_s5, %s1289_s0 }
  0x31   : > { %p853_p6 = pnand %p851_p3, %p824_p9 }
  0x33   : > { %p854_p8 = pneg %p853_p6 }
  0x35   : > { %p859_p12 = pnand %p857_p10, %p854_p8 }
  0x37   : > { %862 = shalt.err (!%p859_p12)
}
  0x38   : > { %s863_s26 = scalar_lea.vmem %s166_s29, 16  ;;  %s870_s10 = scalar_lea.vmem %s166_s29, 32 }
  0x39   : > { %p864_p0 = scmp.ne.s32.totalorder %s166_s29, %s863_s26  ;;  %p871_p11 = scmp.lt.s32.totalorder %s166_s29, %s166_s29 }
  0x3a   : > { %p872_p13 = scmp.lt.s32.totalorder %s870_s10, %s863_s26 }
  0x3b   : > { %p866_p2 = pnand %p864_p0, %p824_p9 }
  0x3c   : > { %p873_p4 = por %p872_p13, %p871_p11 }
  0x3d   : > { %p867_p7 = pneg %p866_p2 }
  0x3f   : > { %p874_p1 = pnand %p873_p4, %p867_p7 }
  0x41   : > { %877 = shalt.err (!%p874_p1)
}
  0x42   : > { %737 = dma.hbm_to_vmem [thread:$0]  (!%p1105_p5), %s1289_s0, 16, %s166_s29, [#allocation5]  }
  0x43   : > { %s72_s20 = sadd.s32 1, %s986_s14  ;;  %s39_s25 = sadd.s32 1, %s994_s16 }
  0x44   : > { %s191_s30 = sand.u32 1, %s998_s17   ;;  %p41_p9 = scmp.ge.s32.totalorder %s39_s25, 2 }
  0x45   : > { %s193_s4 = sand.u32 1, %s986_s14   ;;  %s680_s5 = sshll.u32 %s994_s16, 8 }
  0x46   : > { %s1321_s25 = smov (%p41_p9, %s39_s25), 0  ;;  %s661_s27 = sshll.u32 %s193_s4, 4 }
  0x47   : > { %s1167_s8 = scalar_lea.hbm %s1290_s1, %s680_s5  ;;  %s69_s29 = ssub.s32 %s994_s16, %s1321_s25 }
  0x48   : > { %p70_p5 = scmp.eq.s32.totalorder %s69_s29, 0  ;;  %s195_s9 = scalar_lea.vmem [#allocation7], %s661_s27 }
  0x49   : > { %s202_s26 = sshll.u32 %s195_s9, 4  ;;  %s1176_s11 = scalar_lea.sflag [#allocation8], %s191_s30  ;;  %s1171_s26 = int_to_ptr.vmem [resolvable:$true] %s202_s26 }
  0x4a   : > { %s1174_s10 = scalar_select %p70_p5, %s986_s14, %s72_s20  }
  0x4b   : > { %s878_s19 = scalar_lea.hbm %s1167_s8, 256  ;;  %p1305_p6 = scmp.ne.s32.totalorder %s1304_s28, 0 }
  0x4c   : > { %p879_p3 = scmp.ne.s32.totalorder %s1167_s8, %s878_s19  ;;  %s883_s6 = scalar_lea.hbm %s1290_s1, 512 }
  0x4d   : > { %p880_p8 = pneg %p1305_p6  ;;  %p884_p0 = scmp.lt.u32.totalorder %s1167_s8, %s1290_s1 }
  0x4e   : > { %p885_p2 = scmp.lt.u32.totalorder %s883_s6, %s878_s19  ;;  %p887_p11 = scmp.lt.u32.totalorder %s878_s19, %s1167_s8 }
  0x4f   : > { %p881_p10 = pnand %p880_p8, %p879_p3 }
  0x50   : > { %p886_p7 = por %p885_p2, %p884_p0 }
  0x51   : > { %p882_p12 = pneg %p881_p10 }
  0x52   : > { %p888_p13 = por %p887_p11, %p886_p7 }
  0x54   : > { %p889_p4 = pnand %p888_p13, %p882_p12 }
  0x56   : > { %892 = shalt.err (!%p889_p4)
}
  0x57   : > { %s893_s20 = scalar_lea.vmem %s1171_s26, 256  ;;  %s1004_s30 = smov [#allocation7]  }
  0x58   : > { %p894_p1 = scmp.ne.s32.totalorder %s1171_s26, %s893_s20  ;;  %s898_s29 = sshll.u32 %s1004_s30, 4  ;;  %s899_s29 = int_to_ptr.vmem [resolvable:$false] %s898_s29 }
  0x59   : > { %s900_s9 = scalar_lea.vmem %s899_s29, 512  ;;  %p901_p3 = scmp.lt.s32.totalorder %s1171_s26, %s899_s29 }
  0x5a   : > { %p896_p9 = pnand %p894_p1, %p880_p8  ;;  %p902_p10 = scmp.lt.s32.totalorder %s900_s9, %s893_s20 }
  0x5c   : > { %p897_p5 = pneg %p896_p9  ;;  %p903_p0 = por %p902_p10, %p901_p3 }
  0x5e   : > { %p904_p2 = pnand %p903_p0, %p897_p5 }
  0x60   : > { %907 = shalt.err (!%p904_p2)
}
  0x61   : > { %s1005_s19 = smov 128   ;;  %s1006_s4 = smov 8  }
  0x62   : > { %744 = dma.hbm_to_vmem [thread:$0]  (!%p1305_p6), %s1167_s8, 256, %s1171_s26, %s1176_s11, %s1005_s19, %s1005_s19, %s1006_s4  }
  0x63   : > { %p1306_p8 = scmp.ne.s32.totalorder %s1302_s24, 0 }
  0x64   : > { %p1307_p12 = scmp.eq.s32.totalorder (!%p1306_p8), %s1065_s18, 0 }
  0x65   : > { %214 = sbr.rel (%p1306_p8) target bundleno = 794 (0x31a), region = 32 }
  0x6c   : > { %961 = dma.done.wait (%p1307_p12), [#allocation5], 16   ;;  %p1308_p7 = pmov %p1307_p12 }
  0x6d   : > { %s220_s5 = sand.u32 1, %s1065_s18   ;;  %s1212_s6 = sand.u32 1, %s982_s13  }
  0x6e   : > { %963 = vsyncadd (%p1308_p7), [#allocation5], 4294967280  ;;  %s666_s27 = sshll.u32 %s1212_s6, 4  ;;  %s221_s7 = scalar_lea.sflag [#allocation8], %s220_s5 }
  0x6f   : > { %s224_s28 = scalar_lea.vmem [#allocation7], %s666_s27  ;;  %p1309_p6 = scmp.ne.s32.totalorder %s1299_s21, 0 }
  0x71   : > { %965 = dma.done.wait (%p1309_p6), %s221_s7, 256  }
  0x72   : > { %967 = vsyncadd (%p1309_p6), %s221_s7, 4294967040  ;;  %p1310_p11 = pmov %p1308_p7 }
  0x73   : > { %p1311_p13 = pmov %p1308_p7 }
  0x74   : > { %969 = dma.done.wait (%p1310_p11), [#allocation8], 256  }
  0x75   : > { %971 = vsyncadd (%p1311_p13), [#allocation8], 4294967040  ;;  %v1007_v0 = vmov 0.0   ;;  %vm1008_vm0 = vmmov 0   ;;  %v817_v1 = vld [vmem:[%s224_s28] ss:$8 sps:$4 sm:$0xff]  }
  0x76   : > { %689 = vmatprep.subr.bf16.mxu1 %v1007_v0  ;;  %701 = vmatprep.subr.bf16.mxu0 %v1007_v0  ;;  %s1009_s24 = smov 119   ;;  %s1010_s8 = smov 127   ;;  %v819_v2 = vld [vmem:[%s224_s28 + $0x4] ss:$8 sps:$4 sm:$0xff]   ;;  %vm281_vm1 = vcmask 1039360   ;;  %vm378_vm2 = vcmask 973824  }
  0x77   : > { %691 = vmatprep.mubr.msk.bf16.mxu1 %vm1008_vm0, %v1007_v0  ;;  %703 = vmatprep.mubr.msk.bf16.mxu0 %vm1008_vm0, %v1007_v0  ;;  %s1011_s21 = smov 118   ;;  %vm431_vm3 = vcmask 965632   ;;  %v268_v9 = vld [vmem:[#allocation9 + $0x4] sm:$0xf]  ;;  %vm284_vm4 = vcmask 130048   ;;  %vm256_vm5 = vcmask 7168  }
  0x78   : > { %374 = vrot.lane.b32.xlu1 %v817_v1, %s1009_s24  ;;  %277 = vrot.lane.b32.xlu0 %v817_v1, %s1010_s8  ;;  %v373_v10 = vld [vmem:[#allocation9 + $0x8] sm:$0xf]  ;;  %v266_v14 = vld [vmem:[#allocation9] sm:$0xf]  ;;  %v426_v15 = vld [vmem:[#allocation9 + $0xc] sm:$0xf] }
  0x79   : > { %257 = vst.msk [vmem:[#allocation2] sm:$0xff] %vm256_vm5, %v1007_v0  ;;  %258 = vst.msk [vmem:[#allocation3] sm:$0xff] %vm256_vm5, %v1007_v0  ;;  %v675_v18 = vld [vmem:[#allocation4] ss:$0 sm:$0xff]  ;;  %v1012_v28 = vmov 0   ;;  %s668_s18 = sshll.u32 %s1212_s6, 3 }
  0x7a   : > { %815 = vset.pattern.permute.xlu0 %v1012_v28  ;;  %816 = vset.pattern.permute.xlu1 %v1012_v28  ;;  %s677_s26 = sshll.u32 %s990_s15, 7  ;;  %s250_s11 = scalar_lea.vmem [#allocation10], %s668_s18 }
  0x7b   : > { %s545_s20 = sshll.u32 %s250_s11, 4  ;;  %s1240_s9 = scalar_lea.hbm %s1292_s3, %s677_s26  ;;  %s1242_s20 = int_to_ptr.vmem [resolvable:$true] %s545_s20 }
  0x7c   : > { %376 = vrot.lane.b32.xlu1 %v819_v2, %s1009_s24  ;;  %279 = vrot.lane.b32.xlu0 %v819_v2, %s1010_s8  ;;  %s531_s19 = scalar_lea.sflag [#allocation6], %s1212_s6  ;;  %s908_s4 = scalar_lea.vmem %s1242_s20, 128 }
  0x7d   : > { %p909_p4 = scmp.ne.s32.totalorder %s1242_s20, %s908_s4  ;;  %p1312_p1 = scmp.ne.s32.totalorder %s1300_s22, 0 }
  0x7e   : > { %s1013_s15 = smov [#allocation10]  }
  0x7f   : > { %p910_p9 = pnand %p909_p4, %p1312_p1  ;;  %s912_s5 = sshll.u32 %s1013_s15, 4  ;;  %s913_s5 = int_to_ptr.vmem [resolvable:$false] %s912_s5 }
  0x80   : > { %429 = vrot.lane.b32.xlu1 %v819_v2, %s1011_s21  ;;  %427 = vrot.lane.b32.xlu0 %v817_v1, %s1011_s21  ;;  %v486_v29 = vld [vmem:[#allocation2] sm:$0xff]  ;;  %v492_v31 = vld [vmem:[#allocation3] sm:$0xff]  ;;  %s914_s27 = scalar_lea.vmem %s913_s5, 256  ;;  %p915_p3 = scmp.lt.s32.totalorder %s1242_s20, %s913_s5 }
  0x81   : > { %p911_p5 = pneg %p910_p9  ;;  %p916_p10 = scmp.lt.s32.totalorder %s914_s27, %s908_s4 }
  0x83   : > { %p917_p0 = por %p916_p10, %p915_p3 }
  0x85   : > { %p918_p2 = pnand %p917_p0, %p911_p5 }
  0xea   : > { %v375_v3 = vpop.permute.xlu1 %374  ;;  %v278_v4 = vpop.permute.xlu0 %277 }
  0xee   : > { %v377_v5 = vpop.permute.xlu1 %376  ;;  %v280_v6 = vpop.permute.xlu0 %279 }
  0xef   : > { %v282_v7 = vsel %vm281_vm1, %v278_v4, %v280_v6  ;;  %v379_v8 = vsel %vm378_vm2, %v375_v3, %v377_v5 }
  0xf0   : > { %690 = vmatpush3.bf16.msra.mxu1 %v282_v7  ;;  %702 = vmatpush3.bf16.msra.mxu0 %v379_v8 }
  0xf1   : > { %695 = vmatprep.subr.bf16.mxu1 %v1007_v0  ;;  %707 = vmatprep.subr.bf16.mxu0 %v1007_v0 }
  0xf2   : > { %v430_v11 = vpop.permute.xlu1 %429  ;;  %v428_v12 = vpop.permute.xlu0 %427 }
  0xf3   : > { %v432_v13 = vsel %vm431_vm3, %v428_v12, %v430_v11  ;;  %692 = vmatmul.mubr.msk.bf16.vlgmr.msra.gmra.mrb[0].mxu1 %vm284_vm4, %v268_v9  ;;  %704 = vmatmul.mubr.msk.bf16.vlgmr.msra.gmra.mrb[0].mxu0 %vm284_vm4, %v373_v10 }
  0xf4   : > { %696 = vmatpush3.bf16.msra.mxu1 %v817_v1  ;;  %708 = vmatpush3.bf16.msra.mxu0 %v432_v13 }
  0xf5   : > { %697 = vmatprep.mubr.msk.bf16.mxu1 %vm1008_vm0, %v1007_v0  ;;  %709 = vmatprep.mubr.msk.bf16.mxu0 %vm1008_vm0, %v1007_v0 }
  0xff   : > { %698 = vmatmul.mubr.msk.bf16.vlgmr.msra.gmra.mrb[0].mxu1 %vm284_vm4, %v266_v14  ;;  %710 = vmatmul.mubr.msk.bf16.vlgmr.msra.gmra.mrb[0].mxu0 %vm284_vm4, %v426_v15 }
 0x1d2   : > { %v366_v16 = vpop.f32.mrb[0].mxu1  ;;  %v471_v17 = vpop.f32.mrb[0].mxu0 }
 0x1d3   : > { %v713_v19 = vadd.f32 %v471_v17, %v366_v16  ;;  %v699_v20 = vpop.f32.mrb[1].mxu1  ;;  %v711_v21 = vpop.f32.mrb[1].mxu0 }
 0x1d4   : > { %v369_v22 = vpop.f32.mrb[2].mxu1  ;;  %v474_v23 = vpop.f32.mrb[2].mxu0 }
 0x1d5   : > { %v700_v24 = vpop.f32.mrb[3].mxu1  ;;  %v712_v25 = vpop.f32.mrb[3].mxu0  ;;  %v485_v26 = vmul.f32 %v713_v19, %v675_v18 }
 0x1d7   : > { %487 = vadd.xlane.f32.xlu0 %v485_v26  ;;  %v493_v27 = vmul.f32 %v485_v26, %v485_v26 }
 0x1d9   : > { %494 = vadd.xlane.f32.xlu1 %v493_v27 }
 0x264   : > { %v488_v30 = vpop.xlane.xlu0 %487 }
 0x265   : > { %v489_v32 = vadd.f32 %v488_v30, %v486_v29 }
 0x266   : > { %v495_v33 = vpop.xlane.xlu1 %494 }
 0x267   : > { %491 = vst.msk [vmem:[#allocation2] sm:$0xff] %vm256_vm5, %v489_v32  ;;  %v496_v34 = vadd.f32 %v495_v33, %v492_v31 }
 0x269   : > { %497 = vst.msk [vmem:[#allocation3] sm:$0xff] %vm256_vm5, %v496_v34 }
 0x26e   : > { %v503_v35 = vld [vmem:[#allocation2] sm:$0xff] }
 0x26f   : > { %v504_v36 = vmul.f32 0.015625, %v503_v35 }
 0x270   : > { %v505_v37 = vld [vmem:[#allocation3] sm:$0xff] }
 0x271   : > { %v506_v38 = vmul.f32 0.015625, %v505_v37  ;;  %v507_v39 = vmul.f32 %v504_v36, %v504_v36  ;;  %v512_v43 = vsub.f32 0.0, %v504_v36 }
 0x273   : > { %v508_v40 = vsub.f32 %v506_v38, %v507_v39 }
 0x275   : > { %v509_v41 = vmax.f32 %v508_v40, 0.0 }
 0x277   : > { %v510_v42 = vadd.f32 1e-05, %v509_v41 }
 0x279   : > { %820 = vrsqrt.f32 %v510_v42 }
 0x283   : > { %v821_v44 = vpop.eup %820 }
 0x284   : > { %517 = vperm.xlu0 %815, %v821_v44   ;;  %v513_v45 = vmul.f32 %v821_v44, %v512_v43 }
 0x286   : > { %523 = vperm.xlu1 %816, %v513_v45  }
 0x303   : > { %v518_v46 = vpop.permute.xlu0 %517 }
 0x304   : > { %v520_v47 = vmul.f32 %v713_v19, %v518_v46 }
 0x305   : > { %v524_v48 = vpop.permute.xlu1 %523 }
 0x306   : > { %v526_v49 = vadd.f32 %v524_v48, %v520_v47 }
 0x308   : > { %v527_v50 = vmul.f32 0.2, %v526_v49 }
 0x30a   : > { %v528_v51 = vmax.f32 %v526_v49, %v527_v50 }
 0x30c   : > { %529 = vst [vmem:[%s250_s11] sm:$0xff] %v528_v51 }
 0x30d   : > { %921 = shalt.err (!%p918_p2)
}
 0x30e   : > { %s922_s6 = scalar_lea.hbm %s1240_s9, 128  ;;  %s926_s24 = scalar_lea.hbm %s1292_s3, 256 }
 0x30f   : > { %p923_p8 = scmp.ne.s32.totalorder %s1240_s9, %s922_s6  ;;  %p927_p6 = scmp.lt.u32.totalorder %s1240_s9, %s1292_s3 }
 0x310   : > { %p928_p11 = scmp.lt.u32.totalorder %s926_s24, %s922_s6  ;;  %p930_p4 = scmp.lt.u32.totalorder %s922_s6, %s1240_s9 }
 0x311   : > { %p924_p12 = pnand %p923_p8, %p1312_p1 }
 0x312   : > { %p929_p13 = por %p928_p11, %p927_p6 }
 0x313   : > { %p925_p7 = pneg %p924_p12 }
 0x314   : > { %p931_p9 = por %p930_p4, %p929_p13 }
 0x316   : > { %p932_p5 = pnand %p931_p9, %p925_p7 }
 0x318   : > { %935 = shalt.err (!%p932_p5)
}
 0x319   : > { %732 = dma.vmem_to_hbm [thread:$0]  (%p1312_p1), %s1242_s20, 128, %s1240_s9, %s531_s19  }
 0x31a PF: > { %s557_s18 = sand.u32 1, %s978_s12   ;;  %p1313_p3 = scmp.ne.s32.totalorder %s1301_s23, 0 }
 0x31b   : > { %p1314_p10 = scmp.ge.s32.totalorder %s998_s17, 2  ;;  %s558_s26 = scalar_lea.sflag [#allocation6], %s557_s18 }
 0x31d   : > { %p746_p0 = pnand %p1314_p10, %p1313_p3 }
 0x31f   : > { %973 = dma.done.wait (!%p746_p0), %s558_s26, 128  }
 0x320   : > { %975 = vsyncadd (!%p746_p0), %s558_s26, 4294967168  ;;  %s20_s17 = sadd.s32 1, %s998_s17   ;;  %s1315_s12 = smov %s982_s13 }
 0x321   : > { %p17_p2 = scmp.ge.s32.totalorder %s20_s17, 4   ;;  %s1316_s13 = smov %s986_s14 }
 0x322   : > { %s1317_s14 = smov %s1174_s10  ;;  %s1318_s15 = smov %s994_s16 }
 0x323   : > { %s1319_s16 = smov %s1321_s25  ;;  %19 = sbr.rel (!%p17_p2) target bundleno = 7 (0x7), region = 101 }
 0x32a   :  { %563 = vsyncpa [#allocation5], 1 }
 0x32b   :  { %565 = vsyncpa [#allocation5 + $0x1], 1 }
 0x32c   :  { %566 = vsyncpa [#allocation8], 1 }
 0x32d   :  { %568 = vsyncpa [#allocation8 + $0x1], 1 }
 0x32e   :  { %569 = vsyncpa [#allocation6], 1 }
 0x32f   :  { %571 = vsyncpa [#allocation6 + $0x1], 1 }

</bundles_post_ra>
